<compile_context>
chip_gen: v6e
topology: v6e:2x2x1
jax: 0.10.0
libtpu: 0.0.40
codegen_flags: <defaults>
</compile_context>

<pallas_src>
import functools

import jax
import jax.numpy as jnp
from jax.experimental import pallas as pl
from jax.experimental.pallas import tpu as pltpu

LN_EPS = 1e-5  # torch.nn.LayerNorm default


def _round_up(x, m):
    return (x + m - 1) // m * m


def _w1_rows(input_dim):
    # bf16 sublane tile is 16 rows; keep every weight-block row offset aligned.
    return _round_up(input_dim, 16)


# Row indices inside the f32 vector slab (16, 128).
(_B1, _G1, _BE1,
 _B2, _G2, _BE2,
 _B3, _G3, _BE3,
 _BP1, _GP1, _BEP1,
 _BV1, _BP2, _WV2, _BV2) = range(16)


def mpl_reinforce_kernel(x_ref, w_ref, v_ref, out_ref, *, r1, output_dim):
    f32 = jnp.float32
    bf16 = jnp.bfloat16

    lane = jax.lax.broadcasted_iota(jnp.int32, (1, 128), 1)

    def vrow(i):
        return v_ref[i:i + 1, :]                      # (1,128) f32 view

    def silu(h):
        return h * jax.nn.sigmoid(h)

    def ln(h, g, b, n):
        # Two INDEPENDENT cross-lane reductions (var = E[h^2] - mu^2) instead of
        # mean -> subtract -> second reduction: halves the XLU dependency depth.
        inv_n = f32(1.0 / n)
        mu = jnp.sum(h, axis=-1, keepdims=True) * inv_n
        ex2 = jnp.sum(h * h, axis=-1, keepdims=True) * inv_n
        var = ex2 - mu * mu
        return (h - mu) * jax.lax.rsqrt(var + LN_EPS) * g + b

    def bdot(a, w_bf16):                              # bf16 MXU, f32 accumulate
        return jnp.dot(a.astype(bf16), w_bf16, preferred_element_type=f32)

    x = x_ref[...]                                    # (TM, r1) bf16, zero-padded

    # ---------------- feature trunk ----------------
    # Layer 1: Linear(input_dim, 64) padded to 128 lanes.  Weight cols 64: and
    # bias/gamma/beta lanes 64: are exactly zero (asserted in pack_params), so
    # h is exactly 0 on padded lanes -> LN-over-64 can reduce over all 128
    # lanes with no mask, and padded lanes stay exactly 0 after LN + SiLU.
    h = jnp.dot(x, w_ref[0:r1, 0:128], preferred_element_type=f32) + vrow(_B1)
    h = silu(ln(h, vrow(_G1), vrow(_BE1), 64))

    # Layer 2: Linear(64,128) (rows 64: of the packed weight are zero) + LN + SiLU
    h = silu(ln(bdot(h, w_ref[r1:r1 + 128, 0:128]) + vrow(_B2),
                vrow(_G2), vrow(_BE2), 128))
    # Layer 3: Linear(128,128) + LN + SiLU
    feat = silu(ln(bdot(h, w_ref[r1:r1 + 128, 128:256]) + vrow(_B3),
                   vrow(_G3), vrow(_BE3), 128))

    # -------- fused head first layers: feat @ [wp1 | wv1] --------
    hv = bdot(feat, w_ref[r1 + 128:r1 + 256, :])      # (TM, 256)
    p = silu(ln(hv[:, 0:128] + vrow(_BP1), vrow(_GP1), vrow(_BEP1), 128))
    v = silu(hv[:, 128:256] + vrow(_BV1))

    # -------- policy logits (padded to 128 lanes) + lane-masked softmax --------
    logits = bdot(p, w_ref[r1 + 256:r1 + 384, 0:128]) + vrow(_BP2)
    valid = lane < output_dim
    lm = jnp.where(valid, logits, f32(-1e30))
    m = jnp.max(lm, axis=-1, keepdims=True)
    e = jnp.exp(lm - m)                               # exp == 0 on masked lanes
    probs = e / jnp.sum(e, axis=-1, keepdims=True)    # exact normalization

    # -------- value tail: VPU multiply + lane reduce (no N=1 MXU matmul) --------
    val = jnp.sum(v * vrow(_WV2), axis=-1, keepdims=True) + v_ref[_BV2:_BV2 + 1, 0:1]

    # -------- single lane-dense output slab: probs | value | zeros --------
    out_ref[...] = jnp.where(lane == output_dim, val, probs)


def init_params(key, input_dim, output_dim):
    """torch.nn.Linear-style init (uniform(-1/sqrt(fan_in), 1/sqrt(fan_in))).

    Matmul weights are rounded through bf16 since that is how the kernel stores
    them (packed bf16 slab); biases / LayerNorm params / wv2 stay f32.
    """
    def lin(k, fan_in, fan_out, bf16_weight=True):
        kw, kb = jax.random.split(k)
        bound = 1.0 / float(fan_in) ** 0.5
        w = jax.random.uniform(kw, (fan_in, fan_out), jnp.float32, -bound, bound)
        if bf16_weight:
            w = w.astype(jnp.bfloat16).astype(jnp.float32)
        b = jax.random.uniform(kb, (fan_out,), jnp.float32, -bound, bound)
        return w, b

    def ln(dim):
        return jnp.ones((dim,), jnp.float32), jnp.zeros((dim,), jnp.float32)

    k = jax.random.split(key, 7)
    p = {}
    p["w1"], p["b1"] = lin(k[0], input_dim, 64)
    p["g1"], p["be1"] = ln(64)
    p["w2"], p["b2"] = lin(k[1], 64, 128)
    p["g2"], p["be2"] = ln(128)
    p["w3"], p["b3"] = lin(k[2], 128, 128)
    p["g3"], p["be3"] = ln(128)
    p["wp1"], p["bp1"] = lin(k[3], 128, 128)
    p["gp1"], p["bep1"] = ln(128)
    p["wp2"], p["bp2"] = lin(k[4], 128, output_dim)
    p["wv1"], p["bv1"] = lin(k[5], 128, 128)
    p["wv2"], p["bv2"] = lin(k[6], 128, 1, bf16_weight=False)  # used on VPU in f32
    return p


def pack_params(params, input_dim, output_dim):
    """Pack all parameters into (w_slab bf16 (r1+384, 256), v_slab f32 (16, 128))."""
    r1 = _w1_rows(input_dim)

    w = jnp.zeros((r1 + 384, 256), jnp.float32)
    w = w.at[0:input_dim, 0:64].set(params["w1"])                # w1 (pad cols 64:)
    w = w.at[r1:r1 + 64, 0:128].set(params["w2"])                # w2 (pad rows 64:)
    w = w.at[r1:r1 + 128, 128:256].set(params["w3"])             # w3
    w = w.at[r1 + 128:r1 + 256, 0:128].set(params["wp1"])        # heads: [wp1 | wv1]
    w = w.at[r1 + 128:r1 + 256, 128:256].set(params["wv1"])
    w = w.at[r1 + 256:r1 + 384, 0:output_dim].set(params["wp2"])  # wp2 (pad cols od:)
    w_slab = w.astype(jnp.bfloat16)

    v = jnp.zeros((16, 128), jnp.float32)
    rows = {
        _B1: params["b1"], _G1: params["g1"], _BE1: params["be1"],
        _B2: params["b2"], _G2: params["g2"], _BE2: params["be2"],
        _B3: params["b3"], _G3: params["g3"], _BE3: params["be3"],
        _BP1: params["bp1"], _GP1: params["gp1"], _BEP1: params["bep1"],
        _BV1: params["bv1"], _BP2: params["bp2"],
        _WV2: params["wv2"].reshape(-1),
    }
    for i, vec in rows.items():
        v = v.at[i, 0:vec.shape[0]].set(vec)
    v = v.at[_BV2, 0].set(params["bv2"][0])

    # Guard the layer-1 unmasked-LN invariant: these regions MUST stay zero.
    assert int(jnp.count_nonzero(w_slab[0:r1, 64:128])) == 0            # w1 pad cols
    assert int(jnp.count_nonzero(v[_B1, 64:])) == 0                      # b1 pad
    assert int(jnp.count_nonzero(v[_G1, 64:])) == 0                      # gamma1 pad
    assert int(jnp.count_nonzero(v[_BE1, 64:])) == 0                     # beta1 pad
    assert int(jnp.count_nonzero(w_slab[r1 + 64:r1 + 128, 0:128])) == 0  # w2 pad rows
    return w_slab, v


@functools.partial(jax.jit, static_argnames=("input_dim", "output_dim"))
def mpl_reinforce_forward(state, w_slab, v_slab, *, input_dim, output_dim):
    assert 0 < output_dim < 128 and input_dim >= 1
    b = state.shape[0]
    r1 = _w1_rows(input_dim)

    # Batch tile: one tile for small batches, 512-row pipelined tiles at
    # rollout scale (parallel grid -> both TensorCores on v7x).
    if b <= 512:
        tm = _round_up(b, 16)
    else:
        tm = 512
    bp = _round_up(b, tm)

    # Pre-cast to bf16 and pad (rows -> bp, features -> r1) host-side so the
    # first matmul contraction and the w_slab slice are tile-aligned for any
    # input_dim, and the input DMA moves half the bytes.
    x = state.astype(jnp.bfloat16)
    x = jnp.pad(x, ((0, bp - b), (0, r1 - input_dim)))

    kernel = functools.partial(mpl_reinforce_kernel, r1=r1, output_dim=output_dim)

    # Advisory cost for XLA scheduling around this small custom call.
    flops = 2 * bp * (r1 * 128 + 128 * 128 + 128 * 128 + 128 * 256
                      + 128 * 128 + 128)
    transcendentals = bp * 768          # 5 sigmoids + softmax exp, 128 lanes each
    bytes_accessed = (w_slab.size * 2 + v_slab.size * 4
                      + bp * (r1 * 2 + 128 * 4))
    cost = pl.CostEstimate(flops=flops, transcendentals=transcendentals,
                           bytes_accessed=bytes_accessed)

    out = pl.pallas_call(
        kernel,
        out_shape=jax.ShapeDtypeStruct((bp, 128), jnp.float32),
        grid_spec=pltpu.PrefetchScalarGridSpec(
            num_scalar_prefetch=0,
            grid=(bp // tm,),
            in_specs=[
                pl.BlockSpec((tm, r1), lambda i: (i, 0)),          # state tiles
                pl.BlockSpec((r1 + 384, 256), lambda i: (0, 0)),   # weights: resident
                pl.BlockSpec((16, 128), lambda i: (0, 0)),         # vectors: resident
            ],
            out_specs=pl.BlockSpec((tm, 128), lambda i: (i, 0)),
        ),
        compiler_params=pltpu.CompilerParams(
            dimension_semantics=("parallel",)),
        cost_estimate=cost,
    )(x, w_slab, v_slab)

    probs = out[:b, :output_dim]
    value = out[:b, output_dim:output_dim + 1]
    return probs, value


def reference_forward(state, params):
    """Pure-JAX f32 reference matching the PyTorch module semantics."""
    p = params

    def lin(x, w, b):
        return x @ w + b

    def lnorm(h, g, b):
        mu = h.mean(-1, keepdims=True)
        var = ((h - mu) ** 2).mean(-1, keepdims=True)
        return (h - mu) / jnp.sqrt(var + LN_EPS) * g + b

    def silu(h):
        return h * jax.nn.sigmoid(h)

    h = silu(lnorm(lin(state, p["w1"], p["b1"]), p["g1"], p["be1"]))
    h = silu(lnorm(lin(h, p["w2"], p["b2"]), p["g2"], p["be2"]))
    feat = silu(lnorm(lin(h, p["w3"], p["b3"]), p["g3"], p["be3"]))
    pol = silu(lnorm(lin(feat, p["wp1"], p["bp1"]), p["gp1"], p["bep1"]))
    probs = jax.nn.softmax(lin(pol, p["wp2"], p["bp2"]), axis=1)
    val = lin(silu(lin(feat, p["wv1"], p["bv1"])), p["wv2"], p["bv2"])
    return probs, val


def _check(state, params, w_slab, v_slab, input_dim, output_dim):
    probs, value = mpl_reinforce_forward(state, w_slab, v_slab,
                                         input_dim=input_dim, output_dim=output_dim)
    jax.block_until_ready((probs, value))
    ref_probs, ref_value = reference_forward(state, params)
    assert probs.shape == (state.shape[0], output_dim)
    assert value.shape == (state.shape[0], 1)
    # bf16 matmul operands -> loosened tolerances (weights pre-rounded through
    # bf16 so the f32 reference uses identical weights).
    assert jnp.allclose(probs, ref_probs, atol=2e-2, rtol=2e-2), \
        f"probs max err {float(jnp.max(jnp.abs(probs - ref_probs)))}"
    assert jnp.allclose(value, ref_value, atol=2e-2, rtol=2e-2), \
        f"value max err {float(jnp.max(jnp.abs(value - ref_value)))}"
    # Exact softmax normalization in-kernel -> tight row-sum check.
    assert jnp.allclose(jnp.sum(probs, axis=1), 1.0, atol=1e-4)


if __name__ == "__main__":
    INPUT_DIM = 32
    OUTPUT_DIM = 4
    BATCH = 8

    key = jax.random.PRNGKey(0)
    k_state, k_params, k_big = jax.random.split(key, 3)

    params = init_params(k_params, INPUT_DIM, OUTPUT_DIM)
    # Pack once; the two slabs stay device-resident and are reused every
    # rollout step (no per-step 22-array DMA).
    w_slab, v_slab = pack_params(params, INPUT_DIM, OUTPUT_DIM)

    # Per-step rollout shape (single 16-row tile, grid=(1,)).
    state = jax.random.normal(k_state, (BATCH, INPUT_DIM), jnp.float32)
    _check(state, params, w_slab, v_slab, INPUT_DIM, OUTPUT_DIM)

    # Rollout-scale batch exercising the pipelined multi-tile grid
    # (TM=512, grid=(2,), row padding discarded in the wrapper).
    big_state = jax.random.normal(k_big, (600, INPUT_DIM), jnp.float32)
    _check(big_state, params, w_slab, v_slab, INPUT_DIM, OUTPUT_DIM)

    print("KERNEL_OK")
</pallas_src>

<mosaic_0001>
module attributes {stable_mosaic.version = 11 : i64} {
  func.func @mpl_reinforce_kernel(%arg0: i32, %arg1: memref<16x32xbf16, #tpu.memory_space<vmem>>, %arg2: memref<416x256xbf16, #tpu.memory_space<vmem>>, %arg3: memref<16x128xf32, #tpu.memory_space<vmem>>, %arg4: memref<16x128xf32, #tpu.memory_space<vmem>>) attributes {dimension_semantics = [#tpu.dimension_semantics<parallel>], iteration_bounds = array<i64: 1>, scalar_prefetch = 0 : i64, scratch_operands = 0 : i64, tpu.core_type = #tpu.core_type<tc>, window_params = [{transform_indices = @transform_0, window_bounds = array<i64: 16, 32>}, {pipeline_mode = #tpu.pipeline_mode<synchronous>, transform_indices = @transform_1, window_bounds = array<i64: 416, 256>}, {pipeline_mode = #tpu.pipeline_mode<synchronous>, transform_indices = @transform_2, window_bounds = array<i64: 16, 128>}, {transform_indices = @transform_3, window_bounds = array<i64: 16, 128>}]} {
    %0 = tpu.iota {dimensions = array<i32: 1>} : vector<1x128xi32>
    %c0 = arith.constant 0 : index
    %c0_0 = arith.constant 0 : index
    %1 = vector.load %arg1[%c0, %c0_0] : memref<16x32xbf16, #tpu.memory_space<vmem>>, vector<16x32xbf16>
    %c0_1 = arith.constant 0 : index
    %c0_2 = arith.constant 0 : index
    %2 = vector.load %arg2[%c0_1, %c0_2] : memref<416x256xbf16, #tpu.memory_space<vmem>>, vector<32x128xbf16>
    %cst = arith.constant dense<0.000000e+00> : vector<16x128xf32>
    %3 = tpu.matmul %1, %2, %cst {dimension_numbers = #tpu.dot_dimension_numbers<[1], [0], [0], [1], [0, 0, 1, 1], [], []>} : vector<16x32xbf16>, vector<32x128xbf16>, vector<16x128xf32> -> vector<16x128xf32>
    %c0_3 = arith.constant 0 : index
    %c0_4 = arith.constant 0 : index
    %4 = vector.load %arg3[%c0_3, %c0_4] : memref<16x128xf32, #tpu.memory_space<vmem>>, vector<1x128xf32>
    %5 = vector.broadcast %4 : vector<1x128xf32> to vector<16x128xf32>
    %6 = arith.addf %3, %5 : vector<16x128xf32>
    %c1 = arith.constant 1 : index
    %c0_5 = arith.constant 0 : index
    %7 = vector.load %arg3[%c1, %c0_5] : memref<16x128xf32, #tpu.memory_space<vmem>>, vector<1x128xf32>
    %c2 = arith.constant 2 : index
    %c0_6 = arith.constant 0 : index
    %8 = vector.load %arg3[%c2, %c0_6] : memref<16x128xf32, #tpu.memory_space<vmem>>, vector<1x128xf32>
    %cst_7 = arith.constant dense<0.000000e+00> : vector<16xf32>
    %9 = vector.multi_reduction <add>, %6, %cst_7 [1] : vector<16x128xf32> to vector<16xf32>
    %10 = vector.shape_cast %9 : vector<16xf32> to vector<16x1xf32>
    %cst_8 = arith.constant 1.562500e-02 : f32
    %11 = vector.broadcast %cst_8 : f32 to vector<16x1xf32>
    %12 = arith.mulf %10, %11 : vector<16x1xf32>
    %13 = arith.mulf %6, %6 : vector<16x128xf32>
    %cst_9 = arith.constant dense<0.000000e+00> : vector<16xf32>
    %14 = vector.multi_reduction <add>, %13, %cst_9 [1] : vector<16x128xf32> to vector<16xf32>
    %15 = vector.shape_cast %14 : vector<16xf32> to vector<16x1xf32>
    %cst_10 = arith.constant 1.562500e-02 : f32
    %16 = vector.broadcast %cst_10 : f32 to vector<16x1xf32>
    %17 = arith.mulf %15, %16 : vector<16x1xf32>
    %18 = arith.mulf %12, %12 : vector<16x1xf32>
    %19 = arith.subf %17, %18 : vector<16x1xf32>
    %20 = vector.broadcast %12 : vector<16x1xf32> to vector<16x128xf32>
    %21 = arith.subf %6, %20 : vector<16x128xf32>
    %cst_11 = arith.constant 9.99999974E-6 : f32
    %22 = vector.broadcast %cst_11 : f32 to vector<16x1xf32>
    %23 = arith.addf %19, %22 : vector<16x1xf32>
    %24 = math.rsqrt %23 : vector<16x1xf32>
    %25 = vector.broadcast %24 : vector<16x1xf32> to vector<16x128xf32>
    %26 = arith.mulf %21, %25 : vector<16x128xf32>
    %27 = vector.broadcast %7 : vector<1x128xf32> to vector<16x128xf32>
    %28 = arith.mulf %26, %27 : vector<16x128xf32>
    %29 = vector.broadcast %8 : vector<1x128xf32> to vector<16x128xf32>
    %30 = arith.addf %28, %29 : vector<16x128xf32>
    %31 = arith.negf %30 : vector<16x128xf32>
    %32 = math.exp %31 : vector<16x128xf32>
    %cst_12 = arith.constant 1.000000e+00 : f32
    %33 = vector.broadcast %cst_12 : f32 to vector<16x128xf32>
    %34 = arith.addf %33, %32 : vector<16x128xf32>
    %35 = arith.divf %33, %34 : vector<16x128xf32>
    %36 = arith.mulf %30, %35 : vector<16x128xf32>
    %c32 = arith.constant 32 : index
    %c0_13 = arith.constant 0 : index
    %37 = vector.load %arg2[%c32, %c0_13] : memref<416x256xbf16, #tpu.memory_space<vmem>>, vector<128x128xbf16>
    %38 = arith.truncf %36 : vector<16x128xf32> to vector<16x128xbf16>
    %cst_14 = arith.constant dense<0.000000e+00> : vector<16x128xf32>
    %39 = tpu.matmul %38, %37, %cst_14 {dimension_numbers = #tpu.dot_dimension_numbers<[1], [0], [0], [1], [0, 0, 1, 1], [], []>} : vector<16x128xbf16>, vector<128x128xbf16>, vector<16x128xf32> -> vector<16x128xf32>
    %c3 = arith.constant 3 : index
    %c0_15 = arith.constant 0 : index
    %40 = vector.load %arg3[%c3, %c0_15] : memref<16x128xf32, #tpu.memory_space<vmem>>, vector<1x128xf32>
    %41 = vector.broadcast %40 : vector<1x128xf32> to vector<16x128xf32>
    %42 = arith.addf %39, %41 : vector<16x128xf32>
    %c4 = arith.constant 4 : index
    %c0_16 = arith.constant 0 : index
    %43 = vector.load %arg3[%c4, %c0_16] : memref<16x128xf32, #tpu.memory_space<vmem>>, vector<1x128xf32>
    %c5 = arith.constant 5 : index
    %c0_17 = arith.constant 0 : index
    %44 = vector.load %arg3[%c5, %c0_17] : memref<16x128xf32, #tpu.memory_space<vmem>>, vector<1x128xf32>
    %cst_18 = arith.constant dense<0.000000e+00> : vector<16xf32>
    %45 = vector.multi_reduction <add>, %42, %cst_18 [1] : vector<16x128xf32> to vector<16xf32>
    %46 = vector.shape_cast %45 : vector<16xf32> to vector<16x1xf32>
    %cst_19 = arith.constant 7.812500e-03 : f32
    %47 = vector.broadcast %cst_19 : f32 to vector<16x1xf32>
    %48 = arith.mulf %46, %47 : vector<16x1xf32>
    %49 = arith.mulf %42, %42 : vector<16x128xf32>
    %cst_20 = arith.constant dense<0.000000e+00> : vector<16xf32>
    %50 = vector.multi_reduction <add>, %49, %cst_20 [1] : vector<16x128xf32> to vector<16xf32>
    %51 = vector.shape_cast %50 : vector<16xf32> to vector<16x1xf32>
    %cst_21 = arith.constant 7.812500e-03 : f32
    %52 = vector.broadcast %cst_21 : f32 to vector<16x1xf32>
    %53 = arith.mulf %51, %52 : vector<16x1xf32>
    %54 = arith.mulf %48, %48 : vector<16x1xf32>
    %55 = arith.subf %53, %54 : vector<16x1xf32>
    %56 = vector.broadcast %48 : vector<16x1xf32> to vector<16x128xf32>
    %57 = arith.subf %42, %56 : vector<16x128xf32>
    %cst_22 = arith.constant 9.99999974E-6 : f32
    %58 = vector.broadcast %cst_22 : f32 to vector<16x1xf32>
    %59 = arith.addf %55, %58 : vector<16x1xf32>
    %60 = math.rsqrt %59 : vector<16x1xf32>
    %61 = vector.broadcast %60 : vector<16x1xf32> to vector<16x128xf32>
    %62 = arith.mulf %57, %61 : vector<16x128xf32>
    %63 = vector.broadcast %43 : vector<1x128xf32> to vector<16x128xf32>
    %64 = arith.mulf %62, %63 : vector<16x128xf32>
    %65 = vector.broadcast %44 : vector<1x128xf32> to vector<16x128xf32>
    %66 = arith.addf %64, %65 : vector<16x128xf32>
    %67 = arith.negf %66 : vector<16x128xf32>
    %68 = math.exp %67 : vector<16x128xf32>
    %cst_23 = arith.constant 1.000000e+00 : f32
    %69 = vector.broadcast %cst_23 : f32 to vector<16x128xf32>
    %70 = arith.addf %69, %68 : vector<16x128xf32>
    %71 = arith.divf %69, %70 : vector<16x128xf32>
    %72 = arith.mulf %66, %71 : vector<16x128xf32>
    %c32_24 = arith.constant 32 : index
    %c128 = arith.constant 128 : index
    %73 = vector.load %arg2[%c32_24, %c128] : memref<416x256xbf16, #tpu.memory_space<vmem>>, vector<128x128xbf16>
    %74 = arith.truncf %72 : vector<16x128xf32> to vector<16x128xbf16>
    %cst_25 = arith.constant dense<0.000000e+00> : vector<16x128xf32>
    %75 = tpu.matmul %74, %73, %cst_25 {dimension_numbers = #tpu.dot_dimension_numbers<[1], [0], [0], [1], [0, 0, 1, 1], [], []>} : vector<16x128xbf16>, vector<128x128xbf16>, vector<16x128xf32> -> vector<16x128xf32>
    %c6 = arith.constant 6 : index
    %c0_26 = arith.constant 0 : index
    %76 = vector.load %arg3[%c6, %c0_26] : memref<16x128xf32, #tpu.memory_space<vmem>>, vector<1x128xf32>
    %77 = vector.broadcast %76 : vector<1x128xf32> to vector<16x128xf32>
    %78 = arith.addf %75, %77 : vector<16x128xf32>
    %c7 = arith.constant 7 : index
    %c0_27 = arith.constant 0 : index
    %79 = vector.load %arg3[%c7, %c0_27] : memref<16x128xf32, #tpu.memory_space<vmem>>, vector<1x128xf32>
    %c8 = arith.constant 8 : index
    %c0_28 = arith.constant 0 : index
    %80 = vector.load %arg3[%c8, %c0_28] : memref<16x128xf32, #tpu.memory_space<vmem>>, vector<1x128xf32>
    %cst_29 = arith.constant dense<0.000000e+00> : vector<16xf32>
    %81 = vector.multi_reduction <add>, %78, %cst_29 [1] : vector<16x128xf32> to vector<16xf32>
    %82 = vector.shape_cast %81 : vector<16xf32> to vector<16x1xf32>
    %cst_30 = arith.constant 7.812500e-03 : f32
    %83 = vector.broadcast %cst_30 : f32 to vector<16x1xf32>
    %84 = arith.mulf %82, %83 : vector<16x1xf32>
    %85 = arith.mulf %78, %78 : vector<16x128xf32>
    %cst_31 = arith.constant dense<0.000000e+00> : vector<16xf32>
    %86 = vector.multi_reduction <add>, %85, %cst_31 [1] : vector<16x128xf32> to vector<16xf32>
    %87 = vector.shape_cast %86 : vector<16xf32> to vector<16x1xf32>
    %cst_32 = arith.constant 7.812500e-03 : f32
    %88 = vector.broadcast %cst_32 : f32 to vector<16x1xf32>
    %89 = arith.mulf %87, %88 : vector<16x1xf32>
    %90 = arith.mulf %84, %84 : vector<16x1xf32>
    %91 = arith.subf %89, %90 : vector<16x1xf32>
    %92 = vector.broadcast %84 : vector<16x1xf32> to vector<16x128xf32>
    %93 = arith.subf %78, %92 : vector<16x128xf32>
    %cst_33 = arith.constant 9.99999974E-6 : f32
    %94 = vector.broadcast %cst_33 : f32 to vector<16x1xf32>
    %95 = arith.addf %91, %94 : vector<16x1xf32>
    %96 = math.rsqrt %95 : vector<16x1xf32>
    %97 = vector.broadcast %96 : vector<16x1xf32> to vector<16x128xf32>
    %98 = arith.mulf %93, %97 : vector<16x128xf32>
    %99 = vector.broadcast %79 : vector<1x128xf32> to vector<16x128xf32>
    %100 = arith.mulf %98, %99 : vector<16x128xf32>
    %101 = vector.broadcast %80 : vector<1x128xf32> to vector<16x128xf32>
    %102 = arith.addf %100, %101 : vector<16x128xf32>
    %103 = arith.negf %102 : vector<16x128xf32>
    %104 = math.exp %103 : vector<16x128xf32>
    %cst_34 = arith.constant 1.000000e+00 : f32
    %105 = vector.broadcast %cst_34 : f32 to vector<16x128xf32>
    %106 = arith.addf %105, %104 : vector<16x128xf32>
    %107 = arith.divf %105, %106 : vector<16x128xf32>
    %108 = arith.mulf %102, %107 : vector<16x128xf32>
    %c160 = arith.constant 160 : index
    %c0_35 = arith.constant 0 : index
    %109 = vector.load %arg2[%c160, %c0_35] : memref<416x256xbf16, #tpu.memory_space<vmem>>, vector<128x256xbf16>
    %110 = arith.truncf %108 : vector<16x128xf32> to vector<16x128xbf16>
    %cst_36 = arith.constant dense<0.000000e+00> : vector<16x256xf32>
    %111 = tpu.matmul %110, %109, %cst_36 {dimension_numbers = #tpu.dot_dimension_numbers<[1], [0], [0], [1], [0, 0, 1, 1], [], []>} : vector<16x128xbf16>, vector<128x256xbf16>, vector<16x256xf32> -> vector<16x256xf32>
    %112 = vector.extract_strided_slice %111 {offsets = [0, 0], sizes = [16, 128], strides = [1, 1]} : vector<16x256xf32> to vector<16x128xf32>
    %c9 = arith.constant 9 : index
    %c0_37 = arith.constant 0 : index
    %113 = vector.load %arg3[%c9, %c0_37] : memref<16x128xf32, #tpu.memory_space<vmem>>, vector<1x128xf32>
    %114 = vector.broadcast %113 : vector<1x128xf32> to vector<16x128xf32>
    %115 = arith.addf %112, %114 : vector<16x128xf32>
    %c10 = arith.constant 10 : index
    %c0_38 = arith.constant 0 : index
    %116 = vector.load %arg3[%c10, %c0_38] : memref<16x128xf32, #tpu.memory_space<vmem>>, vector<1x128xf32>
    %c11 = arith.constant 11 : index
    %c0_39 = arith.constant 0 : index
    %117 = vector.load %arg3[%c11, %c0_39] : memref<16x128xf32, #tpu.memory_space<vmem>>, vector<1x128xf32>
    %cst_40 = arith.constant dense<0.000000e+00> : vector<16xf32>
    %118 = vector.multi_reduction <add>, %115, %cst_40 [1] : vector<16x128xf32> to vector<16xf32>
    %119 = vector.shape_cast %118 : vector<16xf32> to vector<16x1xf32>
    %cst_41 = arith.constant 7.812500e-03 : f32
    %120 = vector.broadcast %cst_41 : f32 to vector<16x1xf32>
    %121 = arith.mulf %119, %120 : vector<16x1xf32>
    %122 = arith.mulf %115, %115 : vector<16x128xf32>
    %cst_42 = arith.constant dense<0.000000e+00> : vector<16xf32>
    %123 = vector.multi_reduction <add>, %122, %cst_42 [1] : vector<16x128xf32> to vector<16xf32>
    %124 = vector.shape_cast %123 : vector<16xf32> to vector<16x1xf32>
    %cst_43 = arith.constant 7.812500e-03 : f32
    %125 = vector.broadcast %cst_43 : f32 to vector<16x1xf32>
    %126 = arith.mulf %124, %125 : vector<16x1xf32>
    %127 = arith.mulf %121, %121 : vector<16x1xf32>
    %128 = arith.subf %126, %127 : vector<16x1xf32>
    %129 = vector.broadcast %121 : vector<16x1xf32> to vector<16x128xf32>
    %130 = arith.subf %115, %129 : vector<16x128xf32>
    %cst_44 = arith.constant 9.99999974E-6 : f32
    %131 = vector.broadcast %cst_44 : f32 to vector<16x1xf32>
    %132 = arith.addf %128, %131 : vector<16x1xf32>
    %133 = math.rsqrt %132 : vector<16x1xf32>
    %134 = vector.broadcast %133 : vector<16x1xf32> to vector<16x128xf32>
    %135 = arith.mulf %130, %134 : vector<16x128xf32>
    %136 = vector.broadcast %116 : vector<1x128xf32> to vector<16x128xf32>
    %137 = arith.mulf %135, %136 : vector<16x128xf32>
    %138 = vector.broadcast %117 : vector<1x128xf32> to vector<16x128xf32>
    %139 = arith.addf %137, %138 : vector<16x128xf32>
    %140 = arith.negf %139 : vector<16x128xf32>
    %141 = math.exp %140 : vector<16x128xf32>
    %cst_45 = arith.constant 1.000000e+00 : f32
    %142 = vector.broadcast %cst_45 : f32 to vector<16x128xf32>
    %143 = arith.addf %142, %141 : vector<16x128xf32>
    %144 = arith.divf %142, %143 : vector<16x128xf32>
    %145 = arith.mulf %139, %144 : vector<16x128xf32>
    %146 = vector.extract_strided_slice %111 {offsets = [0, 128], sizes = [16, 128], strides = [1, 1]} : vector<16x256xf32> to vector<16x128xf32>
    %c12 = arith.constant 12 : index
    %c0_46 = arith.constant 0 : index
    %147 = vector.load %arg3[%c12, %c0_46] : memref<16x128xf32, #tpu.memory_space<vmem>>, vector<1x128xf32>
    %148 = vector.broadcast %147 : vector<1x128xf32> to vector<16x128xf32>
    %149 = arith.addf %146, %148 : vector<16x128xf32>
    %150 = arith.negf %149 : vector<16x128xf32>
    %151 = math.exp %150 : vector<16x128xf32>
    %cst_47 = arith.constant 1.000000e+00 : f32
    %152 = vector.broadcast %cst_47 : f32 to vector<16x128xf32>
    %153 = arith.addf %152, %151 : vector<16x128xf32>
    %154 = arith.divf %152, %153 : vector<16x128xf32>
    %155 = arith.mulf %149, %154 : vector<16x128xf32>
    %c288 = arith.constant 288 : index
    %c0_48 = arith.constant 0 : index
    %156 = vector.load %arg2[%c288, %c0_48] : memref<416x256xbf16, #tpu.memory_space<vmem>>, vector<128x128xbf16>
    %157 = arith.truncf %145 : vector<16x128xf32> to vector<16x128xbf16>
    %cst_49 = arith.constant dense<0.000000e+00> : vector<16x128xf32>
    %158 = tpu.matmul %157, %156, %cst_49 {dimension_numbers = #tpu.dot_dimension_numbers<[1], [0], [0], [1], [0, 0, 1, 1], [], []>} : vector<16x128xbf16>, vector<128x128xbf16>, vector<16x128xf32> -> vector<16x128xf32>
    %c13 = arith.constant 13 : index
    %c0_50 = arith.constant 0 : index
    %159 = vector.load %arg3[%c13, %c0_50] : memref<16x128xf32, #tpu.memory_space<vmem>>, vector<1x128xf32>
    %160 = vector.broadcast %159 : vector<1x128xf32> to vector<16x128xf32>
    %161 = arith.addf %158, %160 : vector<16x128xf32>
    %c4_i32 = arith.constant 4 : i32
    %162 = vector.broadcast %c4_i32 : i32 to vector<1x128xi32>
    %163 = arith.cmpi slt, %0, %162 : vector<1x128xi32>
    %cst_51 = arith.constant -1.000000e+30 : f32
    %164 = vector.shape_cast %163 : vector<1x128xi1> to vector<1x128xi1>
    %165 = vector.broadcast %164 : vector<1x128xi1> to vector<16x128xi1>
    %166 = vector.broadcast %cst_51 : f32 to vector<16x128xf32>
    %167 = arith.select %165, %161, %166 : vector<16x128xi1>, vector<16x128xf32>
    %cst_52 = arith.constant dense<0xFF800000> : vector<16xf32>
    %168 = vector.multi_reduction <maximumf>, %167, %cst_52 [1] : vector<16x128xf32> to vector<16xf32>
    %169 = vector.shape_cast %168 : vector<16xf32> to vector<16x1xf32>
    %170 = vector.broadcast %169 : vector<16x1xf32> to vector<16x128xf32>
    %171 = arith.subf %167, %170 : vector<16x128xf32>
    %172 = math.exp %171 : vector<16x128xf32>
    %cst_53 = arith.constant dense<0.000000e+00> : vector<16xf32>
    %173 = vector.multi_reduction <add>, %172, %cst_53 [1] : vector<16x128xf32> to vector<16xf32>
    %174 = vector.shape_cast %173 : vector<16xf32> to vector<16x1xf32>
    %175 = vector.broadcast %174 : vector<16x1xf32> to vector<16x128xf32>
    %176 = arith.divf %172, %175 : vector<16x128xf32>
    %c14 = arith.constant 14 : index
    %c0_54 = arith.constant 0 : index
    %177 = vector.load %arg3[%c14, %c0_54] : memref<16x128xf32, #tpu.memory_space<vmem>>, vector<1x128xf32>
    %178 = vector.broadcast %177 : vector<1x128xf32> to vector<16x128xf32>
    %179 = arith.mulf %155, %178 : vector<16x128xf32>
    %cst_55 = arith.constant dense<0.000000e+00> : vector<16xf32>
    %180 = vector.multi_reduction <add>, %179, %cst_55 [1] : vector<16x128xf32> to vector<16xf32>
    %181 = vector.shape_cast %180 : vector<16xf32> to vector<16x1xf32>
    %c15 = arith.constant 15 : index
    %c0_56 = arith.constant 0 : index
    %182 = vector.load %arg3[%c15, %c0_56] : memref<16x128xf32, #tpu.memory_space<vmem>>, vector<1x1xf32>
    %183 = vector.broadcast %182 : vector<1x1xf32> to vector<16x1xf32>
    %184 = arith.addf %181, %183 : vector<16x1xf32>
    %c4_i32_57 = arith.constant 4 : i32
    %185 = vector.broadcast %c4_i32_57 : i32 to vector<1x128xi32>
    %186 = arith.cmpi eq, %0, %185 : vector<1x128xi32>
    %187 = vector.shape_cast %186 : vector<1x128xi1> to vector<1x128xi1>
    %188 = vector.broadcast %187 : vector<1x128xi1> to vector<16x128xi1>
    %189 = vector.shape_cast %184 : vector<16x1xf32> to vector<16x1xf32>
    %190 = vector.broadcast %189 : vector<16x1xf32> to vector<16x128xf32>
    %191 = arith.select %188, %190, %176 : vector<16x128xi1>, vector<16x128xf32>
    %c0_58 = arith.constant 0 : index
    %c0_59 = arith.constant 0 : index
    %192 = vector.load %arg4[%c0_58, %c0_59] : memref<16x128xf32, #tpu.memory_space<vmem>>, vector<16x128xf32>
    tpu.vector_store %arg4[%c0_58, %c0_59], %191 {strides = array<i32>} : memref<16x128xf32, #tpu.memory_space<vmem>>, vector<16x128xf32>,
    return
  }
  func.func @transform_0(%arg0: i32) -> (i32, i32) {
    %c0_i32 = arith.constant 0 : i32
    %c0_i32_0 = arith.constant 0 : i32
    return %arg0, %c0_i32 : i32, i32
  }
  func.func @transform_1(%arg0: i32) -> (i32, i32) {
    %c0_i32 = arith.constant 0 : i32
    %c0_i32_0 = arith.constant 0 : i32
    %c0_i32_1 = arith.constant 0 : i32
    return %c0_i32, %c0_i32_0 : i32, i32
  }
  func.func @transform_2(%arg0: i32) -> (i32, i32) {
    %c0_i32 = arith.constant 0 : i32
    %c0_i32_0 = arith.constant 0 : i32
    %c0_i32_1 = arith.constant 0 : i32
    return %c0_i32, %c0_i32_0 : i32, i32
  }
  func.func @transform_3(%arg0: i32) -> (i32, i32) {
    %c0_i32 = arith.constant 0 : i32
    %c0_i32_0 = arith.constant 0 : i32
    return %arg0, %c0_i32 : i32, i32
  }
}

</mosaic_0001>

<bundles_post_ra>
// kernel: mpl_reinforce_forward.1
= control target key start
LH: loop header
LB: loop body
LE: loop exit
PB: predicated region body
PF: predicated region fallthrough
CT: control target
= control target key end

     0   :  { %8 = vsyncpa [#allocation3], 0  ;;  %s1197_s12 = smov [#allocation2]   ;;  %s1332_s0 = inlined_call_operand.vmem [shape: bf16[16,32], index: 0, kind: input, shape index: {}]   ;;  %s1333_s1 = inlined_call_operand.hbm [shape: bf16[416,256], index: 1, kind: input, shape index: {}]   ;;  %s1334_s2 = inlined_call_operand.vmem [shape: f32[16,128], index: 2, kind: input, shape index: {}]   ;;  %s1335_s3 = inlined_call_operand.vmem [shape: f32[16,128], index: 3, kind: output, shape index: {}]  }
   0x1   :  { %s16_s13 = sshll.u32 %s1197_s12, 4  ;;  %s17_s13 = int_to_ptr.vmem [resolvable:$true] %s16_s13 }
   0x2   :  { %s1183_s14 = scalar_lea.vmem %s17_s13, 6656  ;;  %p1188_p1 = scmp.lt.s32.totalorder %s17_s13, %s17_s13 }
   0x3   :  { %p1184_p0 = scmp.ne.s32.totalorder %s17_s13, %s1183_s14  ;;  %p1189_p2 = scmp.lt.s32.totalorder %s1183_s14, %s1183_s14 }
   0x5   :  { %p1190_p3 = por %p1189_p2, %p1188_p1 }
   0x7   :  { %p1191_p4 = pnand %p1190_p3, %p1184_p0 }
   0x9   :  { %1194 = shalt.err (!%p1191_p4)
}
   0xa   :  { %s1198_s15 = smov 128   ;;  %s1199_s16 = smov 8  }
   0xb   :  { %22 = dma.hbm_to_vmem [thread:$0]  %s1333_s1, 6656, %s17_s13, [#allocation3], %s1198_s15, %s1198_s15, %s1199_s16  }
   0xc   :  { %1195 = dma.done.wait [#allocation3], 6656  }
   0xd   :  { %1196 = vsyncadd [#allocation3], 4294960640  ;;  %v1200_v0 = vmov 0.0   ;;  %vm1201_vm0 = vmmov 0   ;;  %v1060_v1 = vld [vmem:[#allocation2 + $0x10] ss:$8 sps:$4 sm:$0xff]  }
   0xe   :  { %984 = vmatprep.subr.bf16.mxu0 %v1200_v0  ;;  %988 = vmatprep.mubr.msk.bf16.mxu0 %vm1201_vm0, %v1200_v0  ;;  %v1061_v2 = vld [vmem:[#allocation2] ss:$8 sps:$4 sm:$0xff]   ;;  %vm59_vm1 = vcmask 261120   ;;  %v1063_v13 = vld [vmem:[#allocation2 + $0x90] ss:$8 sps:$4 sm:$0xff]  }
   0xf   :  { %992 = vmatprep.subr.bf16.mxu1 %v1200_v0  ;;  %1008 = vmatprep.mubr.msk.bf16.mxu1 %vm1201_vm0, %v1200_v0  ;;  %v1062_v3 = vld [vmem:[%s1332_s0] sm:$0xff]   ;;  %v1065_v15 = vld [vmem:[#allocation2 + $0x70] ss:$8 sps:$4 sm:$0xff]  }
  0x10   :  { %985 = vmatpush3.bf16.msra.mxu0 %v1060_v1  ;;  %v884_v4 = vld [vmem:[%s1334_s2] ss:$0 sm:$0xff]  ;;  %993 = vmatpush3.bf16.msra.mxu1 %v1063_v13  ;;  %v1067_v17 = vld [vmem:[#allocation2 + $0x50] ss:$8 sps:$4 sm:$0xff]   ;;  %v889_v37 = vld [vmem:[%s1334_s2 + $0x1] ss:$0 sm:$0xff] }
  0x11   :  { %986 = vmatprep.subr.bf16.mxu0 %v1200_v0  ;;  %v1064_v14 = vld [vmem:[#allocation2 + $0x80] ss:$8 sps:$4 sm:$0xff]   ;;  %994 = vmatprep.subr.bf16.mxu1 %v1200_v0  ;;  %v1069_v19 = vld [vmem:[#allocation2 + $0x30] ss:$8 sps:$4 sm:$0xff]  }
  0x12   :  { %v1066_v16 = vld [vmem:[#allocation2 + $0x60] ss:$8 sps:$4 sm:$0xff]  }
  0x13   :  { %v1068_v18 = vld [vmem:[#allocation2 + $0x40] ss:$8 sps:$4 sm:$0xff]  }
  0x14   :  { %987 = vmatpush3.bf16.msra.mxu0 %v1061_v2  ;;  %995 = vmatpush3.bf16.msra.mxu1 %v1064_v14  ;;  %v1070_v20 = vld [vmem:[#allocation2 + $0x20] ss:$8 sps:$4 sm:$0xff]  }
  0x15   :  { %1012 = vmatprep.subr.bf16.mxu0 %v1200_v0  ;;  %996 = vmatprep.subr.bf16.mxu1 %v1200_v0  ;;  %v890_v39 = vld [vmem:[%s1334_s2 + $0x2] ss:$0 sm:$0xff]  ;;  %v893_v58 = vld [vmem:[%s1334_s2 + $0x3] ss:$0 sm:$0xff] }
  0x17   :  { %989 = vmatmul.mubr.msk.bf16.vlgmr.msra.gmra.mxu0 %vm59_vm1, %v1062_v3 }
  0x18   :  { %1028 = vmatprep.mubr.msk.bf16.mxu0 %vm1201_vm0, %v1200_v0  ;;  %997 = vmatpush3.bf16.msra.mxu1 %v1065_v15 }
  0x19   :  { %998 = vmatprep.subr.bf16.mxu1 %v1200_v0 }
  0x1c   :  { %999 = vmatpush3.bf16.msra.mxu1 %v1066_v16 }
  0x1d   :  { %1000 = vmatprep.subr.bf16.mxu1 %v1200_v0 }
  0x20   :  { %1001 = vmatpush3.bf16.msra.mxu1 %v1067_v17 }
  0x21   :  { %1002 = vmatprep.subr.bf16.mxu1 %v1200_v0 }
  0x24   :  { %1003 = vmatpush3.bf16.msra.mxu1 %v1068_v18 }
  0x25   :  { %1004 = vmatprep.subr.bf16.mxu1 %v1200_v0 }
  0x28   :  { %1005 = vmatpush3.bf16.msra.mxu1 %v1069_v19 }
  0x29   :  { %1006 = vmatprep.subr.bf16.mxu1 %v1200_v0 }
  0x2c   :  { %1007 = vmatpush3.bf16.msra.mxu1 %v1070_v20 }
  0xd7   :  { %v97_v5 = vpop.f32.mrf.mxu0 }
  0xd8   :  { %v98_v6 = vadd.f32 %v884_v4, %v97_v5  ;;  %v1072_v5 = vld [vmem:[#allocation2 + $0x84] ss:$8 sps:$4 sm:$0xff]  }
  0xd9   :  { %v990_v7 = vpop.f32.mrf.mxu0 }
  0xda   :  { %106 = vadd.xlane.f32.xlu0 %v98_v6  ;;  %v112_v8 = vmul.f32 %v98_v6, %v98_v6  ;;  %v1074_v7 = vld [vmem:[#allocation2 + $0x64] ss:$8 sps:$4 sm:$0xff]  }
  0xdb   :  { %v100_v9 = vpop.f32.mrf.mxu0 }
  0xdc   :  { %v101_v10 = vadd.f32 %v884_v4, %v100_v9  ;;  %114 = vadd.xlane.f32.xlu1 %v112_v8  ;;  %v1071_v4 = vld [vmem:[#allocation2 + $0x94] ss:$8 sps:$4 sm:$0xff]   ;;  %v1076_v9 = vld [vmem:[#allocation2 + $0x44] ss:$8 sps:$4 sm:$0xff]  }
  0xdd   :  { %v991_v11 = vpop.f32.mrf.mxu0  ;;  %1013 = vmatpush3.bf16.msra.mxu0 %v1071_v4  ;;  %v1075_v8 = vld [vmem:[#allocation2 + $0x54] ss:$8 sps:$4 sm:$0xff]  }
  0xde   :  { %108 = vadd.xlane.f32.xlu0 %v101_v10  ;;  %v113_v12 = vmul.f32 %v101_v10, %v101_v10  ;;  %1014 = vmatprep.subr.bf16.mxu0 %v1200_v0  ;;  %v1078_v11 = vld [vmem:[#allocation2 + $0x24] ss:$8 sps:$4 sm:$0xff]   ;;  %v1093_v4 = vld [vmem:[#allocation2 + $0xd4] ss:$8 sps:$4 sm:$0xff]  }
  0xe0   :  { %116 = vadd.xlane.f32.xlu1 %v113_v12 }
  0xe1   :  { %1015 = vmatpush3.bf16.msra.mxu0 %v1072_v5  ;;  %v1091_v5 = vld [vmem:[#allocation2 + $0xd0] ss:$8 sps:$4 sm:$0xff]  }
  0xe2   :  { %1016 = vmatprep.subr.bf16.mxu0 %v1200_v0 }
 0x163   :  { %v107_v21 = vpop.xlane.xlu0 %106 }
 0x164   :  { %v110_v22 = vmul.f32 0.015625, %v107_v21 }
 0x165   :  { %v115_v23 = vpop.xlane.xlu1 %114 }
 0x166   :  { %v120_v24 = vmul.f32 %v110_v22, %v110_v22  ;;  %v118_v25 = vmul.f32 0.015625, %v115_v23  ;;  %v124_v35 = vsub.f32 %v98_v6, %v110_v22  ;;  %v1073_v6 = vld [vmem:[#allocation2 + $0x74] ss:$8 sps:$4 sm:$0xff]  }
 0x167   :  { %v109_v26 = vpop.xlane.xlu0 %108  ;;  %1017 = vmatpush3.bf16.msra.mxu0 %v1073_v6  ;;  %v1096_v6 = vld [vmem:[#allocation2 + $0xc4] ss:$8 sps:$4 sm:$0xff]  }
 0x168   :  { %v122_v27 = vsub.f32 %v118_v25, %v120_v24  ;;  %v111_v28 = vmul.f32 0.015625, %v109_v26  ;;  %1018 = vmatprep.subr.bf16.mxu0 %v1200_v0 }
 0x169   :  { %v117_v29 = vpop.xlane.xlu1 %116 }
 0x16a   :  { %v126_v30 = vadd.f32 1e-05, %v122_v27  ;;  %v121_v31 = vmul.f32 %v111_v28, %v111_v28  ;;  %v119_v32 = vmul.f32 0.015625, %v117_v29  ;;  %v125_v40 = vsub.f32 %v101_v10, %v111_v28  ;;  %v1077_v10 = vld [vmem:[#allocation2 + $0x34] ss:$8 sps:$4 sm:$0xff]  }
 0x16b   :  { %1019 = vmatpush3.bf16.msra.mxu0 %v1074_v7  ;;  %v902_v28 = vld [vmem:[%s1334_s2 + $0x4] ss:$0 sm:$0xff]  ;;  %v1094_v7 = vld [vmem:[#allocation2 + $0xc0] ss:$8 sps:$4 sm:$0xff]  }
 0x16c   :  { %1111 = vrsqrt.f32 %v126_v30  ;;  %v123_v33 = vsub.f32 %v119_v32, %v121_v31  ;;  %1020 = vmatprep.subr.bf16.mxu0 %v1200_v0  ;;  %v903_v30 = vld [vmem:[%s1334_s2 + $0x5] ss:$0 sm:$0xff] }
 0x16e   :  { %v127_v34 = vadd.f32 1e-05, %v123_v33 }
 0x16f   :  { %1021 = vmatpush3.bf16.msra.mxu0 %v1075_v8  ;;  %v1099_v8 = vld [vmem:[#allocation2 + $0xb4] ss:$8 sps:$4 sm:$0xff]  }
 0x170   :  { %1113 = vrsqrt.f32 %v127_v34  ;;  %1022 = vmatprep.subr.bf16.mxu0 %v1200_v0 }
 0x173   :  { %1023 = vmatpush3.bf16.msra.mxu0 %v1076_v9  ;;  %v1097_v9 = vld [vmem:[#allocation2 + $0xb0] ss:$8 sps:$4 sm:$0xff]  }
 0x174   :  { %1024 = vmatprep.subr.bf16.mxu0 %v1200_v0 }
 0x177   :  { %1025 = vmatpush3.bf16.msra.mxu0 %v1077_v10  ;;  %v1102_v10 = vld [vmem:[#allocation2 + $0xa4] ss:$8 sps:$4 sm:$0xff]  }
 0x178   :  { %1026 = vmatprep.subr.bf16.mxu0 %v1200_v0 }
 0x179   :  { %v1112_v36 = vpop.eup %1111 }
 0x17a   :  { %v130_v38 = vmul.f32 %v1112_v36, %v124_v35 }
 0x17b   :  { %1027 = vmatpush3.bf16.msra.mxu0 %v1078_v11  ;;  %v1100_v11 = vld [vmem:[#allocation2 + $0xa0] ss:$8 sps:$4 sm:$0xff]  }
 0x17c   :  { %v136_v41 = vmul.f32 %v889_v37, %v130_v38  ;;  %1032 = vmatprep.subr.bf16.mxu0 %v1200_v0 }
 0x17d   :  { %v1114_v42 = vpop.eup %1113 }
 0x17e   :  { %v131_v43 = vmul.f32 %v1114_v42, %v125_v40  ;;  %v142_v44 = vadd.f32 %v890_v39, %v136_v41 }
 0x180   :  { %v137_v45 = vmul.f32 %v889_v37, %v131_v43  ;;  %v891_v46 = vmul.f32 -1.442695, %v142_v44 }
 0x182   :  { %v143_v47 = vadd.f32 %v890_v39, %v137_v45  ;;  %1115 = vpow2.f32 %v891_v46 }
 0x184   :  { %v892_v48 = vmul.f32 -1.442695, %v143_v47 }
 0x186   :  { %1117 = vpow2.f32 %v892_v48 }
 0x18f   :  { %v1116_v49 = vpop.eup %1115 }
 0x190   :  { %v150_v50 = vadd.f32 1.0, %v1116_v49  ;;  %v906_v49 = vld [vmem:[%s1334_s2 + $0x6] ss:$0 sm:$0xff] }
 0x192   :  { %1119 = vrcp.f32 %v150_v50 }
 0x193   :  { %v1118_v51 = vpop.eup %1117 }
 0x194   :  { %v151_v52 = vadd.f32 1.0, %v1118_v51 }
 0x196   :  { %1121 = vrcp.f32 %v151_v52 }
 0x19f   :  { %v1120_v53 = vpop.eup %1119 }
 0x1a0   :  { %v156_v55 = vmul.f32 %v1120_v53, %v142_v44 }
 0x1a3   :  { %v1122_v54 = vpop.eup %1121 }
 0x1a4   :  { %v157_v56 = vmul.f32 %v1122_v54, %v143_v47 }
 0x1a6   :  { %v174_v57 = vpack.c.bf16 %v157_v56, %v156_v55 }
 0x1a8   :  { %1009 = vmatmul.mubr.bf16.vlgmr.msra.gmra.mxu1 %v174_v57 }
 0x268   :  { %v262_v59 = vpop.f32.mrf.mxu1 }
 0x269   :  { %v263_v60 = vadd.f32 %v893_v58, %v262_v59  ;;  %v1081_v59 = vld [vmem:[#allocation2 + $0x114] ss:$8 sps:$4 sm:$0xff]  }
 0x26a   :  { %v1010_v61 = vpop.f32.mrf.mxu1  ;;  %585 = vmatprep.subr.bf16.mxu1 %v1081_v59  ;;  %v1105_v59 = vld [vmem:[#allocation2 + $0x170] ss:$8 sps:$4 sm:$0xff]  }
 0x26b   :  { %271 = vadd.xlane.f32.xlu0 %v263_v60  ;;  %v277_v1 = vmul.f32 %v263_v60, %v263_v60  ;;  %v1082_v61 = vld [vmem:[#allocation2 + $0x100] ss:$8 sps:$4 sm:$0xff]  }
 0x26c   :  { %v265_v62 = vpop.f32.mrf.mxu1 }
 0x26d   :  { %v266_v63 = vadd.f32 %v893_v58, %v265_v62  ;;  %v1079_v58 = vld [vmem:[#allocation2 + $0x110] ss:$8 sps:$4 sm:$0xff]   ;;  %v1087_v62 = vld [vmem:[#allocation2 + $0xf4] ss:$8 sps:$4 sm:$0xff]  }
 0x26e   :  { %v1011_v2 = vpop.f32.mrf.mxu1  ;;  %586 = vmatpush1.bf16.msra.mxu1 %v1079_v58  ;;  %v1104_v58 = vld [vmem:[#allocation2 + $0x180] ss:$8 sps:$4 sm:$0xff]  }
 0x26f   :  { %279 = vadd.xlane.f32.xlu0 %v277_v1  ;;  %273 = vadd.xlane.f32.xlu1 %v266_v63  ;;  %v278_v3 = vmul.f32 %v266_v63, %v266_v63  ;;  %v1085_v1 = vld [vmem:[#allocation2 + $0xf0] ss:$8 sps:$4 sm:$0xff]   ;;  %v1090_v2 = vld [vmem:[#allocation2 + $0xe4] ss:$8 sps:$4 sm:$0xff]  }
 0x273   :  { %281 = vadd.xlane.f32.xlu1 %v278_v3  ;;  %v1088_v3 = vld [vmem:[#allocation2 + $0xe0] ss:$8 sps:$4 sm:$0xff]  }
 0x2f4   :  { %v272_v12 = vpop.xlane.xlu0 %271 }
 0x2f5   :  { %v275_v13 = vmul.f32 0.0078125, %v272_v12 }
 0x2f7   :  { %v285_v16 = vmul.f32 %v275_v13, %v275_v13  ;;  %v289_v26 = vsub.f32 %v263_v60, %v275_v13  ;;  %v1084_v60 = vld [vmem:[#allocation2 + $0x104] ss:$8 sps:$4 sm:$0xff]  }
 0x2f8   :  { %v280_v14 = vpop.xlane.xlu0 %279  ;;  %v274_v15 = vpop.xlane.xlu1 %273  ;;  %587 = vmatprep.subr.bf16.mxu1 %v1084_v60  ;;  %v1106_v60 = vld [vmem:[#allocation2 + $0x160] ss:$8 sps:$4 sm:$0xff]  }
 0x2f9   :  { %v283_v17 = vmul.f32 0.0078125, %v280_v14  ;;  %v276_v18 = vmul.f32 0.0078125, %v274_v15  ;;  %588 = vmatpush1.bf16.msra.mxu1 %v1082_v61  ;;  %v1107_v61 = vld [vmem:[#allocation2 + $0x150] ss:$8 sps:$4 sm:$0xff]  }
 0x2fa   :  { %589 = vmatprep.subr.bf16.mxu1 %v1087_v62  ;;  %v1108_v62 = vld [vmem:[#allocation2 + $0x140] ss:$8 sps:$4 sm:$0xff]  }
 0x2fb   :  { %v287_v19 = vsub.f32 %v283_v17, %v285_v16  ;;  %v286_v22 = vmul.f32 %v276_v18, %v276_v18  ;;  %v290_v31 = vsub.f32 %v266_v63, %v276_v18  ;;  %v1202_v63 = vmov 0  }
 0x2fc   :  { %v282_v20 = vpop.xlane.xlu1 %281  ;;  %617 = vmatprep.mubr.bf16.mxu1 %v1202_v63  ;;  %1059 = vset.pattern.permute.xlu1 %v1202_v63 }
 0x2fd   :  { %v291_v21 = vadd.f32 1e-05, %v287_v19  ;;  %v284_v23 = vmul.f32 0.0078125, %v282_v20  ;;  %1058 = vset.pattern.permute.xlu0 %v1202_v63  ;;  %590 = vmatpush1.bf16.msra.mxu1 %v1085_v1  ;;  %v1109_v63 = vld [vmem:[#allocation2 + $0x130] ss:$8 sps:$4 sm:$0xff]  }
 0x2fe   :  { %591 = vmatprep.subr.bf16.mxu1 %v1090_v2  ;;  %v1110_v1 = vld [vmem:[#allocation2 + $0x120] ss:$8 sps:$4 sm:$0xff]  }
 0x2ff   :  { %1123 = vrsqrt.f32 %v291_v21  ;;  %v288_v24 = vsub.f32 %v284_v23, %v286_v22 }
 0x301   :  { %v292_v25 = vadd.f32 1e-05, %v288_v24  ;;  %592 = vmatpush1.bf16.msra.mxu1 %v1088_v3 }
 0x302   :  { %593 = vmatprep.subr.bf16.mxu1 %v1093_v4 }
 0x303   :  { %1125 = vrsqrt.f32 %v292_v25 }
 0x305   :  { %594 = vmatpush1.bf16.msra.mxu1 %v1091_v5 }
 0x306   :  { %595 = vmatprep.subr.bf16.mxu1 %v1096_v6 }
 0x309   :  { %596 = vmatpush1.bf16.msra.mxu1 %v1094_v7 }
 0x30a   :  { %597 = vmatprep.subr.bf16.mxu1 %v1099_v8 }
 0x30c   :  { %v1124_v27 = vpop.eup %1123 }
 0x30d   :  { %v295_v29 = vmul.f32 %v1124_v27, %v289_v26  ;;  %598 = vmatpush1.bf16.msra.mxu1 %v1097_v9 }
 0x30e   :  { %599 = vmatprep.subr.bf16.mxu1 %v1102_v10 }
 0x30f   :  { %v301_v32 = vmul.f32 %v902_v28, %v295_v29 }
 0x310   :  { %v1126_v33 = vpop.eup %1125 }
 0x311   :  { %v296_v34 = vmul.f32 %v1126_v33, %v290_v31  ;;  %v307_v35 = vadd.f32 %v903_v30, %v301_v32  ;;  %600 = vmatpush1.bf16.msra.mxu1 %v1100_v11 }
 0x313   :  { %v302_v36 = vmul.f32 %v902_v28, %v296_v34  ;;  %v904_v37 = vmul.f32 -1.442695, %v307_v35  ;;  %v915_v28 = vld [vmem:[%s1334_s2 + $0x7] ss:$0 sm:$0xff] }
 0x315   :  { %v308_v38 = vadd.f32 %v903_v30, %v302_v36  ;;  %1127 = vpow2.f32 %v904_v37  ;;  %v916_v30 = vld [vmem:[%s1334_s2 + $0x8] ss:$0 sm:$0xff] }
 0x317   :  { %v905_v39 = vmul.f32 -1.442695, %v308_v38 }
 0x319   :  { %1129 = vpow2.f32 %v905_v39 }
 0x322   :  { %v1128_v40 = vpop.eup %1127 }
 0x323   :  { %v315_v41 = vadd.f32 1.0, %v1128_v40 }
 0x325   :  { %1131 = vrcp.f32 %v315_v41 }
 0x326   :  { %v1130_v42 = vpop.eup %1129 }
 0x327   :  { %v316_v43 = vadd.f32 1.0, %v1130_v42 }
 0x329   :  { %1133 = vrcp.f32 %v316_v43 }
 0x332   :  { %v1132_v44 = vpop.eup %1131 }
 0x333   :  { %v321_v46 = vmul.f32 %v1132_v44, %v307_v35 }
 0x336   :  { %v1134_v45 = vpop.eup %1133 }
 0x337   :  { %v322_v47 = vmul.f32 %v1134_v45, %v308_v38 }
 0x339   :  { %v339_v48 = vpack.c.bf16 %v322_v47, %v321_v46 }
 0x33b   :  { %1029 = vmatmul.mubr.bf16.vlgmr.msra.gmra.mxu0 %v339_v48 }
 0x33c   :  { %1048 = vmatprep.mubr.msk.bf16.mxu0 %vm1201_vm0, %v1200_v0 }
 0x3fb   :  { %v427_v50 = vpop.f32.mrf.mxu0 }
 0x3fc   :  { %v1277_v51 = vadd.f32 %v906_v49, %v427_v50 }
 0x3fd   :  { %v1030_v52 = vpop.f32.mrf.mxu0 }
 0x3fe   :  { %436 = vadd.xlane.f32.xlu0 %v1277_v51  ;;  %v442_v55 = vmul.f32 %v1277_v51, %v1277_v51 }
 0x3ff   :  { %v430_v53 = vpop.f32.mrf.mxu0 }
 0x400   :  { %v1280_v54 = vadd.f32 %v906_v49, %v430_v53  ;;  %v935_v49 = vld [vmem:[%s1334_s2 + $0x9] ss:$0 sm:$0xff] }
 0x401   :  { %v1031_v56 = vpop.f32.mrf.mxu0 }
 0x402   :  { %444 = vadd.xlane.f32.xlu0 %v442_v55  ;;  %438 = vadd.xlane.f32.xlu1 %v1280_v54  ;;  %v443_v57 = vmul.f32 %v1280_v54, %v1280_v54 }
 0x406   :  { %446 = vadd.xlane.f32.xlu1 %v443_v57  ;;  %v1103_v57 = vld [vmem:[#allocation2 + $0x190] ss:$8 sps:$4 sm:$0xff]  }
 0x407   :  { %1033 = vmatpush3.bf16.msra.mxu0 %v1103_v57 }
 0x408   :  { %1034 = vmatprep.subr.bf16.mxu0 %v1200_v0 }
 0x40b   :  { %1035 = vmatpush3.bf16.msra.mxu0 %v1104_v58  ;;  %v952_v58 = vld [vmem:[%s1334_s2 + $0xe] ss:$0 sm:$0xff] }
 0x40c   :  { %1036 = vmatprep.subr.bf16.mxu0 %v1200_v0 }
 0x40f   :  { %1037 = vmatpush3.bf16.msra.mxu0 %v1105_v59 }
 0x410   :  { %1038 = vmatprep.subr.bf16.mxu0 %v1200_v0 }
 0x413   :  { %1039 = vmatpush3.bf16.msra.mxu0 %v1106_v60 }
 0x414   :  { %1040 = vmatprep.subr.bf16.mxu0 %v1200_v0 }
 0x417   :  { %1041 = vmatpush3.bf16.msra.mxu0 %v1107_v61 }
 0x418   :  { %1042 = vmatprep.subr.bf16.mxu0 %v1200_v0 }
 0x41b   :  { %1043 = vmatpush3.bf16.msra.mxu0 %v1108_v62 }
 0x41c   :  { %1044 = vmatprep.subr.bf16.mxu0 %v1200_v0 }
 0x41f   :  { %1045 = vmatpush3.bf16.msra.mxu0 %v1109_v63 }
 0x420   :  { %1046 = vmatprep.subr.bf16.mxu0 %v1200_v0  ;;  %v936_v0 = vld [vmem:[%s1334_s2 + $0xa] ss:$0 sm:$0xff] }
 0x423   :  { %1047 = vmatpush3.bf16.msra.mxu0 %v1110_v1 }
 0x487   :  { %v437_v12 = vpop.xlane.xlu0 %436 }
 0x488   :  { %v440_v13 = vmul.f32 0.0078125, %v437_v12 }
 0x48a   :  { %v450_v16 = vmul.f32 %v440_v13, %v440_v13  ;;  %v454_v26 = vsub.f32 %v1277_v51, %v440_v13 }
 0x48b   :  { %v445_v14 = vpop.xlane.xlu0 %444  ;;  %v439_v15 = vpop.xlane.xlu1 %438 }
 0x48c   :  { %v448_v17 = vmul.f32 0.0078125, %v445_v14  ;;  %v441_v18 = vmul.f32 0.0078125, %v439_v15 }
 0x48e   :  { %v452_v19 = vsub.f32 %v448_v17, %v450_v16  ;;  %v451_v22 = vmul.f32 %v441_v18, %v441_v18  ;;  %v455_v31 = vsub.f32 %v1280_v54, %v441_v18 }
 0x48f   :  { %v447_v20 = vpop.xlane.xlu1 %446 }
 0x490   :  { %v456_v21 = vadd.f32 1e-05, %v452_v19  ;;  %v449_v23 = vmul.f32 0.0078125, %v447_v20  ;;  %v937_v19 = vld [vmem:[%s1334_s2 + $0xb] ss:$0 sm:$0xff] }
 0x492   :  { %1135 = vrsqrt.f32 %v456_v21  ;;  %v453_v24 = vsub.f32 %v449_v23, %v451_v22 }
 0x494   :  { %v457_v25 = vadd.f32 1e-05, %v453_v24 }
 0x496   :  { %1137 = vrsqrt.f32 %v457_v25 }
 0x49f   :  { %v1136_v27 = vpop.eup %1135 }
 0x4a0   :  { %v460_v29 = vmul.f32 %v1136_v27, %v454_v26 }
 0x4a2   :  { %v466_v32 = vmul.f32 %v915_v28, %v460_v29 }
 0x4a3   :  { %v1138_v33 = vpop.eup %1137 }
 0x4a4   :  { %v461_v34 = vmul.f32 %v1138_v33, %v455_v31  ;;  %v472_v35 = vadd.f32 %v916_v30, %v466_v32 }
 0x4a6   :  { %v467_v36 = vmul.f32 %v915_v28, %v461_v34  ;;  %v917_v37 = vmul.f32 -1.442695, %v472_v35 }
 0x4a8   :  { %v473_v38 = vadd.f32 %v916_v30, %v467_v36  ;;  %1139 = vpow2.f32 %v917_v37 }
 0x4aa   :  { %v918_v39 = vmul.f32 -1.442695, %v473_v38 }
 0x4ac   :  { %1141 = vpow2.f32 %v918_v39 }
 0x4b5   :  { %v1140_v40 = vpop.eup %1139 }
 0x4b6   :  { %v480_v41 = vadd.f32 1.0, %v1140_v40 }
 0x4b8   :  { %1143 = vrcp.f32 %v480_v41 }
 0x4b9   :  { %v1142_v42 = vpop.eup %1141 }
 0x4ba   :  { %v481_v43 = vadd.f32 1.0, %v1142_v42 }
 0x4bc   :  { %1145 = vrcp.f32 %v481_v43 }
 0x4c5   :  { %v1144_v44 = vpop.eup %1143 }
 0x4c6   :  { %v486_v46 = vmul.f32 %v1144_v44, %v472_v35 }
 0x4c9   :  { %v1146_v45 = vpop.eup %1145 }
 0x4ca   :  { %v487_v47 = vmul.f32 %v1146_v45, %v473_v38  ;;  %v940_v38 = vld [vmem:[%s1334_s2 + $0xc] ss:$0 sm:$0xff] }
 0x4cc   :  { %v504_v48 = vpack.c.bf16 %v487_v47, %v486_v46 }
 0x4ce   :  { %618 = vmatmul.mubr.bf16.vlgmr.msra.gmra.mxu1 %v504_v48  ;;  %v29_v48 = vlaneseq }
 0x58e   :  { %v619_v50 = vpop.f32.mrf.mxu1 }
 0x58f   :  { %v633_v51 = vadd.f32 %v935_v49, %v619_v50  ;;  %v943_v50 = vld [vmem:[%s1334_s2 + $0xd] ss:$0 sm:$0xff] }
 0x590   :  { %v1298_v52 = vpop.f32.mrf.mxu1 }
 0x591   :  { %637 = vadd.xlane.f32.xlu0 %v633_v51  ;;  %v643_v55 = vmul.f32 %v633_v51, %v633_v51  ;;  %v694_v39 = vadd.f32 %v940_v38, %v1298_v52 }
 0x592   :  { %v623_v53 = vpop.f32.mrf.mxu1 }
 0x593   :  { %v634_v54 = vadd.f32 %v935_v49, %v623_v53  ;;  %v941_v41 = vmul.f32 -1.442695, %v694_v39  ;;  %v30_v49 = vand.u32 127, %v29_v48 }
 0x594   :  { %v625_v40 = vpop.f32.mrf.mxu1 }
 0x595   :  { %645 = vadd.xlane.f32.xlu0 %v643_v55  ;;  %639 = vadd.xlane.f32.xlu1 %v634_v54  ;;  %v644_v56 = vmul.f32 %v634_v54, %v634_v54  ;;  %v695_v42 = vadd.f32 %v940_v38, %v625_v40  ;;  %vm821_vm2 = vcmp.lt.s32.totalorder %v30_v49, 4  ;;  %vm862_vm3 = vcmp.eq.s32.totalorder %v30_v49, 4 }
 0x597   :  { %v942_v43 = vmul.f32 -1.442695, %v695_v42 }
 0x599   :  { %647 = vadd.xlane.f32.xlu1 %v644_v56 }
 0x61a   :  { %v638_v2 = vpop.xlane.xlu0 %637 }
 0x61b   :  { %v641_v3 = vmul.f32 0.0078125, %v638_v2 }
 0x61d   :  { %v651_v6 = vmul.f32 %v641_v3, %v641_v3  ;;  %v655_v16 = vsub.f32 %v633_v51, %v641_v3 }
 0x61e   :  { %v646_v4 = vpop.xlane.xlu0 %645  ;;  %v640_v5 = vpop.xlane.xlu1 %639 }
 0x61f   :  { %v649_v7 = vmul.f32 0.0078125, %v646_v4  ;;  %v642_v8 = vmul.f32 0.0078125, %v640_v5 }
 0x621   :  { %v653_v9 = vsub.f32 %v649_v7, %v651_v6  ;;  %v652_v12 = vmul.f32 %v642_v8, %v642_v8  ;;  %v656_v20 = vsub.f32 %v634_v54, %v642_v8 }
 0x622   :  { %v648_v10 = vpop.xlane.xlu1 %647 }
 0x623   :  { %v657_v11 = vadd.f32 1e-05, %v653_v9  ;;  %v650_v13 = vmul.f32 0.0078125, %v648_v10 }
 0x625   :  { %1147 = vrsqrt.f32 %v657_v11  ;;  %v654_v14 = vsub.f32 %v650_v13, %v652_v12  ;;  %v953_v12 = vld [vmem:[%s1334_s2 + $0xf] ss:$0 sm:$0xff] }
 0x627   :  { %v658_v15 = vadd.f32 1e-05, %v654_v14 }
 0x629   :  { %1149 = vrsqrt.f32 %v658_v15 }
 0x632   :  { %v1148_v17 = vpop.eup %1147 }
 0x633   :  { %v661_v18 = vmul.f32 %v1148_v17, %v655_v16 }
 0x635   :  { %v667_v21 = vmul.f32 %v936_v0, %v661_v18 }
 0x636   :  { %v1150_v22 = vpop.eup %1149 }
 0x637   :  { %v662_v23 = vmul.f32 %v1150_v22, %v656_v20  ;;  %v673_v24 = vadd.f32 %v937_v19, %v667_v21 }
 0x639   :  { %v668_v25 = vmul.f32 %v936_v0, %v662_v23  ;;  %v938_v26 = vmul.f32 -1.442695, %v673_v24 }
 0x63b   :  { %v674_v27 = vadd.f32 %v937_v19, %v668_v25  ;;  %1151 = vpow2.f32 %v938_v26 }
 0x63d   :  { %v939_v28 = vmul.f32 -1.442695, %v674_v27 }
 0x63f   :  { %1153 = vpow2.f32 %v939_v28 }
 0x648   :  { %v1152_v29 = vpop.eup %1151 }
 0x649   :  { %v681_v30 = vadd.f32 1.0, %v1152_v29 }
 0x64b   :  { %1155 = vrcp.f32 %v681_v30 }
 0x64c   :  { %v1154_v31 = vpop.eup %1153 }
 0x64d   :  { %v682_v32 = vadd.f32 1.0, %v1154_v31 }
 0x64f   :  { %1157 = vrcp.f32 %v682_v32 }
 0x650   :  { %1159 = vpow2.f32 %v941_v41 }
 0x651   :  { %1161 = vpow2.f32 %v942_v43 }
 0x658   :  { %v1156_v33 = vpop.eup %1155 }
 0x659   :  { %v687_v35 = vmul.f32 %v1156_v33, %v673_v24 }
 0x65c   :  { %v1158_v34 = vpop.eup %1157 }
 0x65d   :  { %v688_v36 = vmul.f32 %v1158_v34, %v674_v27  ;;  %v1160_v44 = vpop.eup %1159 }
 0x65e   :  { %v702_v45 = vadd.f32 1.0, %v1160_v44  ;;  %v1162_v46 = vpop.eup %1161 }
 0x65f   :  { %v726_v37 = vpack.c.bf16 %v688_v36, %v687_v35  ;;  %v703_v47 = vadd.f32 1.0, %v1162_v46 }
 0x660   :  { %1163 = vrcp.f32 %v702_v45 }
 0x661   :  { %1049 = vmatmul.mubr.bf16.vlgmr.msra.gmra.mxu0 %v726_v37  ;;  %1165 = vrcp.f32 %v703_v47 }
 0x66d   :  { %v1164_v51 = vpop.eup %1163 }
 0x66e   :  { %v708_v54 = vmul.f32 %v1164_v51, %v694_v39  ;;  %v1166_v56 = vpop.eup %1165 }
 0x66f   :  { %v709_v61 = vmul.f32 %v1166_v56, %v695_v42 }
 0x670   :  { %v849_v63 = vmul.f32 %v952_v58, %v708_v54 }
 0x671   :  { %v850_v2 = vmul.f32 %v952_v58, %v709_v61 }
 0x721   :  { %v814_v52 = vpop.f32.mrf.mxu0 }
 0x722   :  { %v815_v53 = vadd.f32 %v943_v50, %v814_v52 }
 0x723   :  { %v1050_v55 = vpop.f32.mrf.mxu0 }
 0x724   :  { %v824_v57 = vsel %vm821_vm2, %v815_v53, -1e+30 }
 0x725   :  { %826 = vmax.xlane.f32.xlu0 %v824_v57  ;;  %v817_v59 = vpop.f32.mrf.mxu0 }
 0x726   :  { %v818_v60 = vadd.f32 %v943_v50, %v817_v59 }
 0x727   :  { %v1051_v62 = vpop.f32.mrf.mxu0 }
 0x728   :  { %v825_v1 = vsel %vm821_vm2, %v818_v60, -1e+30 }
 0x729   :  { %851 = vadd.xlane.f32.xlu0 %v849_v63  ;;  %828 = vmax.xlane.f32.xlu1 %v825_v1 }
 0x72d   :  { %853 = vadd.xlane.f32.xlu1 %v850_v2 }
 0x7ae   :  { %v827_v3 = vpop.xlane.xlu0 %826 }
 0x7af   :  { %v830_v4 = vsub.f32 %v824_v57, %v827_v3 }
 0x7b1   :  { %v832_v5 = vmul.f32 1.442695, %v830_v4 }
 0x7b2   :  { %v829_v6 = vpop.xlane.xlu1 %828  ;;  %v852_v13 = vpop.xlane.xlu0 %851 }
 0x7b3   :  { %1167 = vpow2.f32 %v832_v5  ;;  %v831_v7 = vsub.f32 %v825_v1, %v829_v6  ;;  %v860_v15 = vadd.f32 %v953_v12, %v852_v13 }
 0x7b5   :  { %v834_v8 = vmul.f32 1.442695, %v831_v7 }
 0x7b6   :  { %v854_v11 = vpop.xlane.xlu1 %853 }
 0x7b7   :  { %1169 = vpow2.f32 %v834_v8  ;;  %v861_v14 = vadd.f32 %v953_v12, %v854_v11 }
 0x7c0   :  { %v1168_v9 = vpop.eup %1167 }
 0x7c1   :  { %836 = vadd.xlane.f32.xlu0 %v1168_v9 }
 0x7c4   :  { %v1170_v10 = vpop.eup %1169 }
 0x7c5   :  { %838 = vadd.xlane.f32.xlu1 %v1170_v10 }
 0x7d6   :  { %872 = vperm.xlu1 %1059, %v861_v14  }
 0x7d7   :  { %867 = vperm.xlu0 %1058, %v860_v15  }
 0x84a   :  { %v837_v16 = vpop.xlane.xlu0 %836 }
 0x84b   :  { %1171 = vrcp.f32 %v837_v16 }
 0x84e   :  { %v839_v17 = vpop.xlane.xlu1 %838 }
 0x84f   :  { %1173 = vrcp.f32 %v839_v17 }
 0x852   :  { %v868_v19 = vpop.permute.xlu0 %867  ;;  %v873_v23 = vpop.permute.xlu1 %872 }
 0x858   :  { %v1172_v0 = vpop.eup %1171 }
 0x859   :  { %v841_v18 = vmul.f32 %v1172_v0, %v1168_v9 }
 0x85b   :  { %v875_v20 = vsel %vm862_vm3, %v868_v19, %v841_v18 }
 0x85c   :  { %v1174_v21 = vpop.eup %1173  ;;  %877 = vst [vmem:[%s1335_s3] sm:$0xff] %v875_v20 }
 0x85d   :  { %v843_v22 = vmul.f32 %v1174_v21, %v1170_v10 }
 0x85f   :  { %v876_v24 = vsel %vm862_vm3, %v873_v23, %v843_v22 }
 0x860   :  { %878 = vst [vmem:[%s1335_s3 + $0x8] sm:$0xff] %v876_v24 }
 0x861   :  { %883 = vsyncpa [#allocation3], 1 }

</bundles_post_ra>
